<compile_context>
chip_gen: v7x
topology: tpu7x:2x2x1
jax: 0.10.0
libtpu: 0.0.40
codegen_flags: <defaults>
</compile_context>

<pallas_src>
import jax
import jax.numpy as jnp
from jax.experimental import pallas as pl
from jax.experimental.pallas import tpu as pltpu


def _round_up(a, b):
    return (a + b - 1) // b * b


def _cdiv(a, b):
    return (a + b - 1) // b


# dtype itemsize -> sublane pack (second-to-last dim quantum).
_SUBLANE_PACK = {4: 8, 2: 16, 1: 32}


def _pick_tile(dim, target, quantum):
    """Tile that exactly divides the minimally padded dim.

    Pads `dim` only to the layout quantum, then picks the number of blocks
    needed to stay <= `target` and sizes the tile so blocks exactly cover the
    padded dim (waste < one quantum per block instead of up to tile-1).
    Returns (tile, padded_dim).
    """
    dim_q = _round_up(dim, quantum)
    if dim_q <= target:
        return dim_q, dim_q
    nb = _cdiv(dim_q, target)
    tile = _round_up(_cdiv(dim_q, nb), quantum)
    return tile, tile * nb


def _pad2(a, rows, cols):
    if a.shape == (rows, cols):
        return a
    return jnp.pad(a, ((0, rows - a.shape[0]), (0, cols - a.shape[1])))


def _make_linear_kernel(p, fuse_mix, has_bias, use_scratch):
    """Build a kernel variant with exactly the refs it needs."""

    def kernel(*refs):
        refs = list(refs)
        x_ref = refs.pop(0)
        w_ref = refs.pop(0)
        w_orig_ref = refs.pop(0) if fuse_mix else None
        b_ref = refs.pop(0) if has_bias else None
        o_ref = refs.pop(0)
        # f32 outputs accumulate straight into the (k-resident) output block.
        acc_ref = refs.pop(0) if use_scratch else o_ref

        k = pl.program_id(2)

        @pl.when(k == 0)
        def _init():
            if has_bias:
                acc_ref[...] = jnp.broadcast_to(
                    b_ref[...].astype(acc_ref.dtype), acc_ref.shape)
            else:
                acc_ref[...] = jnp.zeros_like(acc_ref)

        w = w_ref[...]
        if fuse_mix:
            # Mix in f32 (v5e VPU has no bf16 VALU), cast once before the MXU.
            w = ((1.0 - p) * w.astype(jnp.float32)
                 + p * w_orig_ref[...].astype(jnp.float32)).astype(w_ref.dtype)

        # Contract the last dim of both operands: (tm, tk) x (tn, tk) -> (tm, tn).
        # No transpose is materialized; output tile is lane-dense.
        acc_ref[...] += jax.lax.dot_general(
            x_ref[...], w,
            dimension_numbers=(((1,), (1,)), ((), ())),
            preferred_element_type=jnp.float32).astype(acc_ref.dtype)

        if use_scratch:
            @pl.when(k == pl.num_programs(2) - 1)
            def _finalize():
                o_ref[...] = acc_ref[...].astype(o_ref.dtype)

    return kernel


def mixout_linear(x, weight, bias=None, original_weight=None, *, p=0.0,
                  training=True, tm=512, tn=512, tk=1024):
    """Pallas implementation of MixoutLinear.forward.

    x:               (M, in_features)
    weight:          (out_features, in_features)   -- torch nn.Linear layout
    bias:            (out_features,) or None
    original_weight: (out_features, in_features) or None
    """
    M, K = x.shape
    N, K_w = weight.shape
    assert K == K_w, "in_features mismatch"

    use_mix = bool(training) and (p > 0.0) and (original_weight is not None)
    has_bias = bias is not None
    out_dtype = x.dtype
    use_scratch = out_dtype != jnp.float32

    # ---- tile / padding choice (minimal padding, tiles divide padded dims) ----
    s_m = _SUBLANE_PACK.get(jnp.dtype(x.dtype).itemsize, 8)
    tm_t, Mp = _pick_tile(M, tm, s_m)
    tn_t, Np = _pick_tile(N, tn, 128)
    tk_t, Kp = _pick_tile(K, tk, 128)
    grid_m, grid_n, grid_k = Mp // tm_t, Np // tn_t, Kp // tk_t

    # ---- hoist the weight mix when weights would be re-streamed per M tile ----
    # Precompute traffic ~3*N*K bytes vs 2*N*K*grid_m fused -> hoist when
    # grid_m > 2.  Also removes the per-step VPU mix and keeps `p` out of the
    # matmul kernel closure (no recompile when sweeping p).
    if use_mix and grid_m > 2:
        w_use = ((1.0 - p) * weight.astype(jnp.float32)
                 + p * original_weight.astype(jnp.float32)).astype(weight.dtype)
        fuse_mix = False
    else:
        w_use = weight
        fuse_mix = use_mix

    # ---- v7x megacore: give both TensorCores a parallel tile ----
    if grid_m == 1 and grid_n == 1 and Np >= 256 and (Np // 128) % 2 == 0:
        tn_t = Np // 2          # free split (no extra padding)
        grid_n = 2
    swap_mn = (grid_m == 1 and grid_n >= 2)

    if swap_mn:                 # leading parallel axis must have >= 2 tiles
        grid = (grid_n, grid_m, grid_k)
        x_map = lambda j, i, k: (i, k)
        w_map = lambda j, i, k: (j, k)
        b_map = lambda j, i, k: (0, j)
        o_map = lambda j, i, k: (i, j)
    else:
        grid = (grid_m, grid_n, grid_k)
        x_map = lambda i, j, k: (i, k)
        w_map = lambda i, j, k: (j, k)
        b_map = lambda i, j, k: (0, j)
        o_map = lambda i, j, k: (i, j)

    inputs = [_pad2(x, Mp, Kp), _pad2(w_use, Np, Kp)]
    in_specs = [pl.BlockSpec((tm_t, tk_t), x_map),
                pl.BlockSpec((tn_t, tk_t), w_map)]
    if fuse_mix:
        inputs.append(_pad2(original_weight, Np, Kp))
        in_specs.append(pl.BlockSpec((tn_t, tk_t), w_map))
    if has_bias:
        b_p = bias if bias.shape[0] == Np else jnp.pad(bias, (0, Np - N))
        inputs.append(b_p.reshape(1, Np))
        in_specs.append(pl.BlockSpec((1, tn_t), b_map))

    # ---- generation-aware VMEM budget ----
    x_bytes = tm_t * tk_t * jnp.dtype(x.dtype).itemsize
    w_bytes = tn_t * tk_t * jnp.dtype(weight.dtype).itemsize * (2 if fuse_mix else 1)
    o_bytes = tm_t * tn_t * jnp.dtype(out_dtype).itemsize
    b_bytes = tn_t * jnp.dtype(bias.dtype).itemsize if has_bias else 0
    acc_bytes = tm_t * tn_t * 4 if use_scratch else 0
    need = 2 * (x_bytes + w_bytes + o_bytes + b_bytes) + acc_bytes
    try:
        vmem_cap = int(pltpu.get_tpu_info().vmem_capacity_bytes)
    except Exception:
        vmem_cap = 64 << 20     # conservative per-TensorCore VMEM (v7x)
    vmem_limit = int(min(max(need + need // 2 + (4 << 20), 32 << 20),
                         (vmem_cap * 7) // 8))

    scratch_shapes = [pltpu.VMEM((tm_t, tn_t), jnp.float32)] if use_scratch else []

    out_p = pl.pallas_call(
        _make_linear_kernel(float(p), fuse_mix, has_bias, use_scratch),
        out_shape=jax.ShapeDtypeStruct((Mp, Np), out_dtype),
        grid=grid,
        in_specs=in_specs,
        out_specs=pl.BlockSpec((tm_t, tn_t), o_map),
        scratch_shapes=scratch_shapes,
        compiler_params=pltpu.CompilerParams(
            dimension_semantics=("parallel", "parallel", "arbitrary"),
            vmem_limit_bytes=vmem_limit),
    )(*inputs)

    if (Mp, Np) != (M, N):
        out_p = out_p[:M, :N]
    return out_p


if __name__ == "__main__":
    key = jax.random.PRNGKey(0)
    k_x, k_w, k_b, k_wo = jax.random.split(key, 4)

    batch, in_features, out_features = 64, 32, 48
    p = 0.3

    x = jax.random.normal(k_x, (batch, in_features), dtype=jnp.float32)
    # Deterministic "checkpoint" parameters (synthetic).
    weight = jax.random.normal(k_w, (out_features, in_features),
                               dtype=jnp.float32) * 0.1
    bias = jax.random.normal(k_b, (out_features,), dtype=jnp.float32) * 0.1
    original_weight = jax.random.normal(k_wo, (out_features, in_features),
                                        dtype=jnp.float32) * 0.1

    # Training path, fused-mix kernel variant (single M tile -> mix in kernel).
    y_mix = jax.block_until_ready(
        mixout_linear(x, weight, bias, original_weight, p=p, training=True))

    # Training path, hoisted mixed-weight precompute (forced multi M-tile).
    y_hoist = jax.block_until_ready(
        mixout_linear(x, weight, bias, original_weight, p=p, training=True,
                      tm=16))

    # Eval path (plain linear, single-weight kernel variant).
    y_eval = jax.block_until_ready(
        mixout_linear(x, weight, bias, original_weight, p=p, training=False))

    # No-bias variant.
    y_nobias = jax.block_until_ready(
        mixout_linear(x, weight, None, original_weight, p=p, training=True))

    # Reference check in plain JAX.
    mixed_w = (1.0 - p) * weight + p * original_weight
    ref_mix = x @ mixed_w.T + bias[None, :]
    ref_eval = x @ weight.T + bias[None, :]
    ref_nobias = x @ mixed_w.T
    assert jnp.allclose(y_mix, ref_mix, atol=1e-4, rtol=1e-4)
    assert jnp.allclose(y_hoist, ref_mix, atol=1e-4, rtol=1e-4)
    assert jnp.allclose(y_eval, ref_eval, atol=1e-4, rtol=1e-4)
    assert jnp.allclose(y_nobias, ref_nobias, atol=1e-4, rtol=1e-4)

    print("KERNEL_OK")
</pallas_src>

<mosaic_0001>
module attributes {stable_mosaic.version = 11 : i64} {
  func.func @kernel(%arg0: i32, %arg1: i32, %arg2: i32, %arg3: memref<64x128xf32, #tpu.memory_space<vmem>>, %arg4: memref<128x128xf32, #tpu.memory_space<vmem>>, %arg5: memref<128x128xf32, #tpu.memory_space<vmem>>, %arg6: memref<1x128xf32, #tpu.memory_space<vmem>>, %arg7: memref<64x128xf32, #tpu.memory_space<vmem>>) attributes {dimension_semantics = [#tpu.dimension_semantics<parallel>, #tpu.dimension_semantics<parallel>, #tpu.dimension_semantics<arbitrary>], iteration_bounds = array<i64: 1, 1, 1>, scalar_prefetch = 0 : i64, scratch_operands = 0 : i64, tpu.core_type = #tpu.core_type<tc>, window_params = [{transform_indices = @transform_0, window_bounds = array<i64: 64, 128>}, {transform_indices = @transform_1, window_bounds = array<i64: 128, 128>}, {transform_indices = @transform_2, window_bounds = array<i64: 128, 128>}, {transform_indices = @transform_3, window_bounds = array<i64: 1, 128>}, {transform_indices = @transform_4, window_bounds = array<i64: 64, 128>}]} {
    %c0_i32 = arith.constant 0 : i32
    %0 = arith.cmpi eq, %arg2, %c0_i32 : i32
    %1 = arith.extui %0 : i1 to i32
    %c0_i32_0 = arith.constant 0 : i32
    %2 = arith.cmpi ne, %1, %c0_i32_0 : i32
    scf.if %2 {
      %c0_12 = arith.constant 0 : index
      %c0_13 = arith.constant 0 : index
      %15 = vector.load %arg6[%c0_12, %c0_13] : memref<1x128xf32, #tpu.memory_space<vmem>>, vector<1x128xf32>
      %16 = vector.shape_cast %15 : vector<1x128xf32> to vector<1x128xf32>
      %17 = vector.broadcast %16 : vector<1x128xf32> to vector<64x128xf32>
      %c0_14 = arith.constant 0 : index
      %c0_15 = arith.constant 0 : index
      %18 = vector.load %arg7[%c0_14, %c0_15] : memref<64x128xf32, #tpu.memory_space<vmem>>, vector<64x128xf32>
      tpu.vector_store %arg7[%c0_14, %c0_15], %17 {strides = array<i32>} : memref<64x128xf32, #tpu.memory_space<vmem>>, vector<64x128xf32>,
    } else {
    }
    %c0 = arith.constant 0 : index
    %c0_1 = arith.constant 0 : index
    %3 = vector.load %arg4[%c0, %c0_1] : memref<128x128xf32, #tpu.memory_space<vmem>>, vector<128x128xf32>
    %cst = arith.constant 0.699999988 : f32
    %4 = vector.broadcast %cst : f32 to vector<128x128xf32>
    %5 = arith.mulf %4, %3 : vector<128x128xf32>
    %c0_2 = arith.constant 0 : index
    %c0_3 = arith.constant 0 : index
    %6 = vector.load %arg5[%c0_2, %c0_3] : memref<128x128xf32, #tpu.memory_space<vmem>>, vector<128x128xf32>
    %cst_4 = arith.constant 3.000000e-01 : f32
    %7 = vector.broadcast %cst_4 : f32 to vector<128x128xf32>
    %8 = arith.mulf %7, %6 : vector<128x128xf32>
    %9 = arith.addf %5, %8 : vector<128x128xf32>
    %c0_5 = arith.constant 0 : index
    %c0_6 = arith.constant 0 : index
    %10 = vector.load %arg7[%c0_5, %c0_6] : memref<64x128xf32, #tpu.memory_space<vmem>>, vector<64x128xf32>
    %c0_7 = arith.constant 0 : index
    %c0_8 = arith.constant 0 : index
    %11 = vector.load %arg3[%c0_7, %c0_8] : memref<64x128xf32, #tpu.memory_space<vmem>>, vector<64x128xf32>
    %cst_9 = arith.constant dense<0.000000e+00> : vector<64x128xf32>
    %12 = tpu.matmul %11, %9, %cst_9 {dimension_numbers = #tpu.dot_dimension_numbers<[1], [1], [0], [0], [0, 0, 1, 0], [], []>} : vector<64x128xf32>, vector<128x128xf32>, vector<64x128xf32> -> vector<64x128xf32>
    %13 = arith.addf %10, %12 : vector<64x128xf32>
    %c0_10 = arith.constant 0 : index
    %c0_11 = arith.constant 0 : index
    %14 = vector.load %arg7[%c0_10, %c0_11] : memref<64x128xf32, #tpu.memory_space<vmem>>, vector<64x128xf32>
    tpu.vector_store %arg7[%c0_10, %c0_11], %13 {strides = array<i32>} : memref<64x128xf32, #tpu.memory_space<vmem>>, vector<64x128xf32>,
    return
  }
  func.func @transform_0(%arg0: i32, %arg1: i32, %arg2: i32) -> (i32, i32) {
    %c0_i32 = arith.constant 0 : i32
    return %arg0, %arg2 : i32, i32
  }
  func.func @transform_1(%arg0: i32, %arg1: i32, %arg2: i32) -> (i32, i32) {
    %c0_i32 = arith.constant 0 : i32
    return %arg1, %arg2 : i32, i32
  }
  func.func @transform_2(%arg0: i32, %arg1: i32, %arg2: i32) -> (i32, i32) {
    %c0_i32 = arith.constant 0 : i32
    return %arg1, %arg2 : i32, i32
  }
  func.func @transform_3(%arg0: i32, %arg1: i32, %arg2: i32) -> (i32, i32) {
    %c0_i32 = arith.constant 0 : i32
    %c0_i32_0 = arith.constant 0 : i32
    return %c0_i32, %arg1 : i32, i32
  }
  func.func @transform_4(%arg0: i32, %arg1: i32, %arg2: i32) -> (i32, i32) {
    %c0_i32 = arith.constant 0 : i32
    return %arg0, %arg1 : i32, i32
  }
}

</mosaic_0001>

<bundles_post_ra>
// kernel: tpu_custom_call.1
= control target key start
LH: loop header
LB: loop body
LE: loop exit
PB: predicated region body
PF: predicated region fallthrough
CT: control target
= control target key end

     0   :  { %9 = vsyncpa [#allocation3], 0  ;;  %s631_s0 = inlined_call_operand.hbm [shape: f32[64,128], index: 0, kind: input, shape index: {}]   ;;  %s632_s1 = inlined_call_operand.hbm [shape: f32[128,128], index: 1, kind: input, shape index: {}]   ;;  %s633_s2 = inlined_call_operand.hbm [shape: f32[128,128], index: 2, kind: input, shape index: {}]   ;;  %s634_s3 = inlined_call_operand.vmem [shape: f32[1,128], index: 3, kind: input, shape index: {}]   ;;  %s635_s4 = inlined_call_operand.hbm [shape: f32[64,128], index: 4, kind: output, shape index: {}]  }
   0x1   :  { %10 = vsyncpa [#allocation6], 0 }
   0x2   :  { %11 = vsyncpa [#allocation4], 0  ;;  %s530_s15 = smov [#allocation5]   ;;  %s531_s17 = smov [#allocation2]  }
   0x3   :  { %s29_s16 = sshll.u32 %s530_s15, 4  ;;  %s17_s18 = sshll.u32 %s531_s17, 4  ;;  %s30_s16 = int_to_ptr.vmem [resolvable:$true] %s29_s16  ;;  %s561_s18 = int_to_ptr.vmem [resolvable:$true] %s17_s18 }
   0x4   :  { %s436_s21 = scalar_lea.hbm %s632_s1, 2048 }
   0x5   :  { %p437_p0 = scmp.ne.s32.totalorder %s632_s1, %s436_s21  ;;  %p440_p1 = scmp.lt.u32.totalorder %s436_s21, %s632_s1 }
   0x7   :  { %p442_p2 = pnand %p440_p1, %p437_p0 }
   0x9   :  { %445 = shalt.err (!%p442_p2)
}
   0xa   :  { %s446_s26 = scalar_lea.vmem %s30_s16, 2048  ;;  %p451_p4 = scmp.lt.s32.totalorder %s30_s16, %s30_s16 }
   0xb   :  { %p447_p3 = scmp.ne.s32.totalorder %s30_s16, %s446_s26  ;;  %p452_p5 = scmp.lt.s32.totalorder %s446_s26, %s446_s26 }
   0xd   :  { %p453_p6 = por %p452_p5, %p451_p4 }
   0xf   :  { %p454_p7 = pnand %p453_p6, %p447_p3 }
  0x11   :  { %457 = shalt.err (!%p454_p7)
}
  0x12   :  { %s532_s27 = smov 128   ;;  %s533_s28 = smov 8  }
  0x13   :  { %35 = dma.hbm_to_vmem [thread:$0]  %s632_s1, 2048, %s30_s16, [#allocation6], %s532_s27, %s532_s27, %s533_s28  }
  0x14   :  { %s458_s7 = scalar_lea.hbm %s631_s0, 1024 }
  0x15   :  { %p459_p8 = scmp.ne.s32.totalorder %s631_s0, %s458_s7  ;;  %p462_p9 = scmp.lt.u32.totalorder %s458_s7, %s631_s0 }
  0x17   :  { %p464_p10 = pnand %p462_p9, %p459_p8 }
  0x19   :  { %467 = shalt.err (!%p464_p10)
}
  0x1a   :  { %s468_s12 = scalar_lea.vmem %s561_s18, 1024  ;;  %p473_p12 = scmp.lt.s32.totalorder %s561_s18, %s561_s18 }
  0x1b   :  { %p469_p11 = scmp.ne.s32.totalorder %s561_s18, %s468_s12  ;;  %p474_p13 = scmp.lt.s32.totalorder %s468_s12, %s468_s12 }
  0x1d   :  { %p475_p0 = por %p474_p13, %p473_p12 }
  0x1f   :  { %p476_p1 = pnand %p475_p0, %p469_p11 }
  0x21   :  { %479 = shalt.err (!%p476_p1)
}
  0x22   :  { %23 = dma.hbm_to_vmem [thread:$0]  %s631_s0, 1024, %s561_s18, [#allocation3], %s532_s27, %s532_s27, %s533_s28  }
  0x23   :  { %s534_s14 = smov [#allocation7]   ;;  %s480_s19 = scalar_lea.hbm %s633_s2, 2048 }
  0x24   :  { %s41_s15 = sshll.u32 %s534_s14, 4  ;;  %p481_p2 = scmp.ne.s32.totalorder %s633_s2, %s480_s19  ;;  %s42_s15 = int_to_ptr.vmem [resolvable:$true] %s41_s15 }
  0x25   :  { %p484_p3 = scmp.lt.u32.totalorder %s480_s19, %s633_s2 }
  0x27   :  { %p486_p4 = pnand %p484_p3, %p481_p2 }
  0x29   :  { %489 = shalt.err (!%p486_p4)
}
  0x2a   :  { %s490_s24 = scalar_lea.vmem %s42_s15, 2048  ;;  %p495_p6 = scmp.lt.s32.totalorder %s42_s15, %s42_s15 }
  0x2b   :  { %p491_p5 = scmp.ne.s32.totalorder %s42_s15, %s490_s24  ;;  %p496_p7 = scmp.lt.s32.totalorder %s490_s24, %s490_s24 }
  0x2d   :  { %p497_p8 = por %p496_p7, %p495_p6 }
  0x2f   :  { %p498_p9 = pnand %p497_p8, %p491_p5 }
  0x31   :  { %501 = shalt.err (!%p498_p9)
}
  0x32   :  { %47 = dma.hbm_to_vmem [thread:$0]  %s633_s2, 2048, %s42_s15, [#allocation6], %s532_s27, %s532_s27, %s533_s28  }
  0x33   :  { %524 = dma.done.wait [#allocation3], 1024  }
  0x34   :  { %525 = vsyncadd [#allocation3], 4294966272 }
  0x35   :  { %526 = dma.done.wait [#allocation6], 4096  }
  0x36   :  { %527 = vsyncadd [#allocation6], 4294963200  ;;  %v78_v0 = vld [vmem:[#allocation5] sm:$0xff]  ;;  %v79_v1 = vld [vmem:[#allocation5 + $0x8] sm:$0xff]  ;;  %s535_s26 = smov [#allocation8]  }
  0x37   :  { %v110_v2 = vld [vmem:[#allocation7] sm:$0xff]  ;;  %v94_v3 = vmul.f32 0.7, %v78_v0  ;;  %v95_v4 = vmul.f32 0.7, %v79_v1  ;;  %v111_v5 = vld [vmem:[#allocation7 + $0x8] sm:$0xff] }
  0x38   :  { %v80_v6 = vld [vmem:[#allocation5 + $0x10] sm:$0xff]  ;;  %v126_v7 = vmul.f32 0.3, %v110_v2  ;;  %v127_v8 = vmul.f32 0.3, %v111_v5  ;;  %v81_v9 = vld [vmem:[#allocation5 + $0x18] sm:$0xff] }
  0x39   :  { %v112_v10 = vld [vmem:[#allocation7 + $0x10] sm:$0xff]  ;;  %v96_v11 = vmul.f32 0.7, %v80_v6  ;;  %v97_v12 = vmul.f32 0.7, %v81_v9  ;;  %v113_v13 = vld [vmem:[#allocation7 + $0x18] sm:$0xff] }
  0x3a   :  { %v82_v14 = vld [vmem:[#allocation5 + $0x20] sm:$0xff]  ;;  %v142_v15 = vadd.f32 %v126_v7, %v94_v3  ;;  %v143_v16 = vadd.f32 %v127_v8, %v95_v4  ;;  %v128_v17 = vmul.f32 0.3, %v112_v10  ;;  %v129_v18 = vmul.f32 0.3, %v113_v13  ;;  %v83_v19 = vld [vmem:[#allocation5 + $0x28] sm:$0xff] }
  0x3b   :  { %v114_v20 = vld [vmem:[#allocation7 + $0x20] sm:$0xff]  ;;  %v98_v21 = vmul.f32 0.7, %v82_v14  ;;  %v99_v22 = vmul.f32 0.7, %v83_v19  ;;  %v115_v23 = vld [vmem:[#allocation7 + $0x28] sm:$0xff] }
  0x3c   :  { %v382_v24 = vpack.c.bf16 %v143_v16, %v142_v15  ;;  %v144_v25 = vadd.f32 %v128_v17, %v96_v11  ;;  %v145_v26 = vadd.f32 %v129_v18, %v97_v12  ;;  %v130_v27 = vmul.f32 0.3, %v114_v20  ;;  %v84_v32 = vld [vmem:[#allocation5 + $0x30] sm:$0xff]  ;;  %v85_v33 = vld [vmem:[#allocation5 + $0x38] sm:$0xff]  ;;  %v166_v41 = vld [vmem:[#allocation2] sm:$0xff]  ;;  %s300_s29 = sshll.u32 %s535_s26, 4  ;;  %s301_s29 = int_to_ptr.vmem [resolvable:$true] %s300_s29 }
  0x3d   :  { %v131_v28 = vmul.f32 0.3, %v115_v23  ;;  %v116_v34 = vld [vmem:[#allocation7 + $0x30] sm:$0xff]  ;;  %v117_v35 = vld [vmem:[#allocation7 + $0x38] sm:$0xff]  ;;  %v100_v36 = vmul.f32 0.7, %v84_v32  ;;  %370 = vmatprep.mubr.f32.mxu0 %v166_v41  ;;  %p507_p11 = scmp.lt.s32.totalorder %s301_s29, %s301_s29 }
  0x3e   :  { %383 = vmatprep.subr.bf16.mxu0 %v382_v24  ;;  %414 = vmatprep.subr.bf16.mxu1 %v382_v24  ;;  %v386_v29 = vpack.c.bf16 %v145_v26, %v144_v25  ;;  %v146_v30 = vadd.f32 %v130_v27, %v98_v21  ;;  %v101_v38 = vmul.f32 0.7, %v85_v33  ;;  %v132_v39 = vmul.f32 0.3, %v116_v34  ;;  %v170_v42 = vld [vmem:[#allocation2 + $0x20] sm:$0xff]  ;;  %v87_v46 = vld [vmem:[#allocation5 + $0x48] sm:$0xff] }
  0x3f   :  { %385 = vmatpush3.bf16.xpose.msra.mxu0 %v382_v24  ;;  %422 = vmatpush3.bf16.xpose.msra.mxu1 %v382_v24  ;;  %v147_v31 = vadd.f32 %v131_v28, %v99_v22  ;;  %v133_v40 = vmul.f32 0.3, %v117_v35  ;;  %v86_v45 = vld [vmem:[#allocation5 + $0x40] sm:$0xff]  ;;  %v119_v48 = vld [vmem:[#allocation7 + $0x48] sm:$0xff]  ;;  %v103_v51 = vmul.f32 0.7, %v87_v46 }
  0x40   :  { %387 = vmatprep.subr.bf16.mxu0 %v386_v29  ;;  %415 = vmatprep.subr.bf16.mxu1 %v386_v29  ;;  %v148_v43 = vadd.f32 %v132_v39, %v100_v36  ;;  %v118_v47 = vld [vmem:[#allocation7 + $0x40] sm:$0xff]  ;;  %v102_v49 = vmul.f32 0.7, %v86_v45  ;;  %v135_v53 = vmul.f32 0.3, %v119_v48  ;;  %v88_v56 = vld [vmem:[#allocation5 + $0x50] sm:$0xff] }
  0x41   :  { %v390_v37 = vpack.c.bf16 %v147_v31, %v146_v30  ;;  %v149_v44 = vadd.f32 %v133_v40, %v101_v38  ;;  %376 = vmatprep.mubr.f32.mxu1 %v170_v42  ;;  %v134_v52 = vmul.f32 0.3, %v118_v47  ;;  %v89_v57 = vld [vmem:[#allocation5 + $0x58] sm:$0xff]  ;;  %v120_v58 = vld [vmem:[#allocation7 + $0x50] sm:$0xff]  ;;  %v104_v60 = vmul.f32 0.7, %v88_v56 }
  0x42   :  { %v151_v55 = vadd.f32 %v135_v53, %v103_v51  ;;  %v121_v59 = vld [vmem:[#allocation7 + $0x58] sm:$0xff]  ;;  %v105_v62 = vmul.f32 0.7, %v89_v57  ;;  %v136_v63 = vmul.f32 0.3, %v120_v58  ;;  %v90_v3 = vld [vmem:[#allocation5 + $0x60] sm:$0xff] }
  0x43   :  { %v394_v50 = vpack.c.bf16 %v149_v44, %v148_v43  ;;  %v150_v54 = vadd.f32 %v134_v52, %v102_v49  ;;  %v137_v0 = vmul.f32 0.3, %v121_v59  ;;  %v91_v4 = vld [vmem:[#allocation5 + $0x68] sm:$0xff]  ;;  %v122_v5 = vld [vmem:[#allocation7 + $0x60] sm:$0xff]  ;;  %v106_v7 = vmul.f32 0.7, %v90_v3 }
  0x44   :  { %v152_v1 = vadd.f32 %v136_v63, %v104_v60  ;;  %v123_v6 = vld [vmem:[#allocation7 + $0x68] sm:$0xff]  ;;  %v107_v9 = vmul.f32 0.7, %v91_v4  ;;  %v138_v10 = vmul.f32 0.3, %v122_v5  ;;  %v92_v14 = vld [vmem:[#allocation5 + $0x70] sm:$0xff] }
  0x45   :  { %v398_v61 = vpack.c.bf16 %v151_v55, %v150_v54  ;;  %v153_v2 = vadd.f32 %v137_v0, %v105_v62  ;;  %v139_v11 = vmul.f32 0.3, %v123_v6  ;;  %v93_v15 = vld [vmem:[#allocation5 + $0x78] sm:$0xff]  ;;  %v124_v16 = vld [vmem:[#allocation7 + $0x70] sm:$0xff]  ;;  %v108_v18 = vmul.f32 0.7, %v92_v14 }
  0x46   :  { %v154_v12 = vadd.f32 %v138_v10, %v106_v7  ;;  %v125_v17 = vld [vmem:[#allocation7 + $0x78] sm:$0xff]  ;;  %v109_v20 = vmul.f32 0.7, %v93_v15  ;;  %v140_v21 = vmul.f32 0.3, %v124_v16  ;;  %v167_v26 = vld [vmem:[#allocation2 + $0x8] sm:$0xff] }
  0x47   :  { %389 = vmatpush3.bf16.xpose.msra.mxu0 %v386_v29  ;;  %423 = vmatpush3.bf16.xpose.msra.mxu1 %v386_v29  ;;  %v402_v8 = vpack.c.bf16 %v153_v2, %v152_v1  ;;  %v155_v13 = vadd.f32 %v139_v11, %v107_v9  ;;  %v141_v22 = vmul.f32 0.3, %v125_v17  ;;  %v171_v27 = vld [vmem:[#allocation2 + $0x28] sm:$0xff]  ;;  %v168_v28 = vld [vmem:[#allocation2 + $0x10] sm:$0xff]  ;;  %v169_v30 = vld [vmem:[#allocation2 + $0x18] sm:$0xff] }
  0x48   :  { %391 = vmatprep.subr.bf16.mxu0 %v390_v37  ;;  %416 = vmatprep.subr.bf16.mxu1 %v390_v37  ;;  %v156_v23 = vadd.f32 %v140_v21, %v108_v18  ;;  %v172_v29 = vld [vmem:[#allocation2 + $0x30] sm:$0xff]  ;;  %v173_v31 = vld [vmem:[#allocation2 + $0x38] sm:$0xff]  ;;  %v313_v32 = vld [vmem:[%s634_s3] ss:$0 sm:$0xff]  ;;  %s502_s3 = scalar_lea.vmem %s301_s29, 1024 }
  0x49   :  { %v406_v19 = vpack.c.bf16 %v155_v13, %v154_v12  ;;  %v157_v24 = vadd.f32 %v141_v22, %v109_v20  ;;  %p503_p10 = scmp.ne.s32.totalorder %s301_s29, %s502_s3  ;;  %p508_p12 = scmp.lt.s32.totalorder %s502_s3, %s502_s3 }
  0x4b   :  { %v410_v25 = vpack.c.bf16 %v157_v24, %v156_v23  ;;  %p509_p13 = por %p508_p12, %p507_p11 }
  0x4d   :  { %p510_p0 = pnand %p509_p13, %p503_p10 }
  0x4f   :  { %393 = vmatpush3.bf16.xpose.msra.mxu0 %v390_v37  ;;  %424 = vmatpush3.bf16.xpose.msra.mxu1 %v390_v37 }
  0x50   :  { %395 = vmatprep.subr.bf16.mxu0 %v394_v50  ;;  %417 = vmatprep.subr.bf16.mxu1 %v394_v50 }
  0x57   :  { %397 = vmatpush3.bf16.xpose.msra.mxu0 %v394_v50  ;;  %425 = vmatpush3.bf16.xpose.msra.mxu1 %v394_v50 }
  0x58   :  { %399 = vmatprep.subr.bf16.mxu0 %v398_v61  ;;  %418 = vmatprep.subr.bf16.mxu1 %v398_v61 }
  0x5f   :  { %401 = vmatpush3.bf16.xpose.msra.mxu0 %v398_v61  ;;  %426 = vmatpush3.bf16.xpose.msra.mxu1 %v398_v61 }
  0x60   :  { %403 = vmatprep.subr.bf16.mxu0 %v402_v8  ;;  %419 = vmatprep.subr.bf16.mxu1 %v402_v8 }
  0x67   :  { %405 = vmatpush3.bf16.xpose.msra.mxu0 %v402_v8  ;;  %427 = vmatpush3.bf16.xpose.msra.mxu1 %v402_v8 }
  0x68   :  { %407 = vmatprep.subr.bf16.mxu0 %v406_v19  ;;  %420 = vmatprep.subr.bf16.mxu1 %v406_v19 }
  0x6f   :  { %409 = vmatpush3.bf16.xpose.msra.mxu0 %v406_v19  ;;  %428 = vmatpush3.bf16.xpose.msra.mxu1 %v406_v19 }
  0x70   :  { %411 = vmatprep.subr.bf16.mxu0 %v410_v25  ;;  %421 = vmatprep.subr.bf16.mxu1 %v410_v25 }
  0x77   :  { %413 = vmatpush3.bf16.xpose.msra.mxu0 %v410_v25  ;;  %429 = vmatpush3.bf16.xpose.msra.mxu1 %v410_v25 }
  0x7e   :  { %371 = vmatmul.mubr.f32.vlgmr.msra.gmra.mrb[0].mxu0 %v167_v26  ;;  %377 = vmatmul.mubr.f32.vlgmr.msra.gmra.mrb[0].mxu1 %v171_v27 }
  0x7f   :  { %373 = vmatprep.mubr.f32.mxu0 %v168_v28  ;;  %379 = vmatprep.mubr.f32.mxu1 %v172_v29 }
  0x82   :  { %374 = vmatmul.mubr.f32.gmra.mrb[2].mxu0 %v169_v30  ;;  %380 = vmatmul.mubr.f32.gmra.mrb[2].mxu1 %v173_v31 }
 0x151   :  { %v372_v33 = vpop.f32.mrb[0].mxu0  ;;  %v378_v34 = vpop.f32.mrb[0].mxu1 }
 0x152   :  { %v280_v35 = vadd.f32 %v372_v33, %v313_v32  ;;  %v284_v36 = vadd.f32 %v378_v34, %v313_v32  ;;  %v240_v37 = vpop.f32.mrb[1].mxu0  ;;  %v260_v38 = vpop.f32.mrb[1].mxu1 }
 0x153   :  { %v279_v39 = vadd.f32 %v313_v32, %v240_v37  ;;  %v283_v40 = vadd.f32 %v313_v32, %v260_v38 }
 0x154   :  { %288 = vst [vmem:[#allocation8 + $0x8] sm:$0xff] %v280_v35  ;;  %292 = vst [vmem:[#allocation8 + $0x28] sm:$0xff] %v284_v36 }
 0x155   :  { %287 = vst [vmem:[#allocation8] sm:$0xff] %v279_v39  ;;  %291 = vst [vmem:[#allocation8 + $0x20] sm:$0xff] %v283_v40  ;;  %v375_v41 = vpop.f32.mrb[2].mxu0  ;;  %v381_v42 = vpop.f32.mrb[2].mxu1 }
 0x156   :  { %v282_v43 = vadd.f32 %v375_v41, %v313_v32  ;;  %v286_v44 = vadd.f32 %v381_v42, %v313_v32  ;;  %v250_v45 = vpop.f32.mrb[3].mxu0  ;;  %v270_v46 = vpop.f32.mrb[3].mxu1 }
 0x157   :  { %v281_v47 = vadd.f32 %v313_v32, %v250_v45  ;;  %v285_v48 = vadd.f32 %v313_v32, %v270_v46 }
 0x158   :  { %290 = vst [vmem:[#allocation8 + $0x18] sm:$0xff] %v282_v43  ;;  %294 = vst [vmem:[#allocation8 + $0x38] sm:$0xff] %v286_v44 }
 0x159   :  { %289 = vst [vmem:[#allocation8 + $0x10] sm:$0xff] %v281_v47  ;;  %293 = vst [vmem:[#allocation8 + $0x30] sm:$0xff] %v285_v48 }
 0x15a   :  { %513 = shalt.err (!%p510_p0)
}
 0x15b   :  { %s514_s6 = scalar_lea.hbm %s635_s4, 1024 }
 0x15c   :  { %p515_p1 = scmp.ne.s32.totalorder %s635_s4, %s514_s6  ;;  %p518_p2 = scmp.lt.u32.totalorder %s514_s6, %s635_s4 }
 0x15e   :  { %p520_p3 = pnand %p518_p2, %p515_p1 }
 0x160   :  { %523 = shalt.err (!%p520_p3)
}
 0x161   :  { %306 = dma.vmem_to_hbm [thread:$0]  %s301_s29, 1024, %s635_s4, [#allocation4], %s532_s27, %s532_s27, %s533_s28  }
 0x162   :  { %528 = dma.done.wait [#allocation4], 1024  }
 0x163   :  { %529 = vsyncadd [#allocation4], 4294966272 }
 0x164   :  { %310 = vsyncpa [#allocation3], 1 }
 0x165   :  { %311 = vsyncpa [#allocation6], 1 }
 0x166   :  { %312 = vsyncpa [#allocation4], 1 }

</bundles_post_ra>
